<compile_context>
chip_gen: v7x
topology: tpu7x:2x2x1
jax: 0.10.0
libtpu: 0.0.40
codegen_flags: <defaults>
</compile_context>

<pallas_src>
import jax
import jax.numpy as jnp
from jax.experimental import pallas as pl
from jax.experimental.pallas import tpu as pltpu

IN_FEATURES = 4
LAYER1 = 100
LAYER2 = 100
OUT_FEATURES = 2

# Padded, MXU/vreg-aligned sizes used inside the kernel.
KP = 8        # layer-1 K padded 4 -> 8 (col 4 is the constant-1 bias column)
H1P = 128
H2P = 128
OUTP = 128    # layer-3 weight kept lane-dense; only lanes 0..1 are real
CARRY = LAYER1  # hidden unit 100 is the constant-1 "bias carrier"


def _cdiv(a, b):
    return -(-a // b)


def _round_up(n, m):
    return ((n + m - 1) // m) * m


def _mlp_kernel(x_ref, w1_ref, w2_ref, w3_ref, o_ref):
    # Layer 1 (+ b1 folded via the ones-column of x): (tb, 8) x (8, 128) on the MXU.
    h1 = jnp.dot(x_ref[...], w1_ref[...], preferred_element_type=jnp.float32)
    h1 = jnp.maximum(h1, 0.0).astype(jnp.bfloat16)     # carrier unit stays exactly 1.0

    # Layer 2 (+ b2 via carrier unit): (tb, 128) x (128, 128) bf16 MXU, f32 accumulate.
    h2 = jnp.dot(h1, w2_ref[...], preferred_element_type=jnp.float32)
    h2 = jnp.maximum(h2, 0.0).astype(jnp.bfloat16)

    # Layer 3 (+ b3 via carrier): (tb, 128) x (128, 128); only lanes 0..1 are real.
    out = jnp.dot(h2, w3_ref[...], preferred_element_type=jnp.float32)
    o_ref[...] = out[:, :OUT_FEATURES].astype(o_ref.dtype)   # narrow (tb, 2) store


def prepare_params(params, compute_dtype=jnp.bfloat16):
    """One-time: fold all biases into zero-padded, MXU-aligned bf16 weight matrices.

    Padding rows/cols are zero and the carrier unit (index 100) stays 1.0 through the
    ReLUs, so the math is identical to the unpadded net (biases travel through bf16).
    """
    f32 = jnp.float32
    w1 = params["w1"].astype(f32)
    b1 = params["b1"].reshape(-1).astype(f32)
    w2 = params["w2"].astype(f32)
    b2 = params["b2"].reshape(-1).astype(f32)
    w3 = params["w3"].astype(f32)
    b3 = params["b3"].reshape(-1).astype(f32)

    w1p = jnp.zeros((KP, H1P), f32)
    w1p = w1p.at[:IN_FEATURES, :LAYER1].set(w1)
    w1p = w1p.at[IN_FEATURES, :LAYER1].set(b1)   # ones-column of x picks up b1
    w1p = w1p.at[IN_FEATURES, CARRY].set(1.0)    # carrier unit = 1 after layer 1

    w2p = jnp.zeros((H1P, H2P), f32)
    w2p = w2p.at[:LAYER1, :LAYER2].set(w2)
    w2p = w2p.at[CARRY, :LAYER2].set(b2)         # carrier injects b2
    w2p = w2p.at[CARRY, CARRY].set(1.0)          # keep carrier alive

    w3p = jnp.zeros((H2P, OUTP), f32)
    w3p = w3p.at[:LAYER2, :OUT_FEATURES].set(w3)
    w3p = w3p.at[CARRY, :OUT_FEATURES].set(b3)   # carrier injects b3

    return {
        "w1p": w1p.astype(compute_dtype),
        "w2p": w2p.astype(compute_dtype),
        "w3p": w3p.astype(compute_dtype),
    }


def vehicle_nn_forward(x, padded_params, *, block_batch=2048,
                       compute_dtype=jnp.bfloat16):
    """x: (B, 4) float32. padded_params: output of prepare_params()."""
    w1p = padded_params["w1p"]
    w2p = padded_params["w2p"]
    w3p = padded_params["w3p"]

    B = x.shape[0]
    # Balanced batch tiles; >= 2 blocks when feasible so v7x uses both TensorCores.
    n_blocks = _cdiv(B, block_batch)
    if B >= 16:
        n_blocks = max(n_blocks, 2)
    tb = _round_up(_cdiv(B, n_blocks), 8)
    b_pad = n_blocks * tb

    # Pad x to (b_pad, 8) bf16 with a constant-1 column (bias carrier into layer 1).
    x_pad = jnp.zeros((b_pad, KP), compute_dtype)
    x_pad = x_pad.at[:B, :IN_FEATURES].set(x.astype(compute_dtype))
    x_pad = x_pad.at[:B, IN_FEATURES].set(1.0)

    const = lambda i: (0, 0)   # weights stay resident in VMEM across grid steps

    cost = pl.CostEstimate(
        flops=2 * B * (IN_FEATURES * LAYER1 + LAYER1 * LAYER2 + LAYER2 * OUT_FEATURES),
        transcendentals=0,
        bytes_accessed=(b_pad * KP * 2 + b_pad * OUT_FEATURES * 4
                        + (KP * H1P + H1P * H2P + H2P * OUTP) * 2),
    )

    out = pl.pallas_call(
        _mlp_kernel,
        out_shape=jax.ShapeDtypeStruct((b_pad, OUT_FEATURES), jnp.float32),
        grid=(n_blocks,),
        in_specs=[
            pl.BlockSpec((tb, KP), lambda i: (i, 0)),   # x tile (pipelined over batch)
            pl.BlockSpec((KP, H1P), const),             # w1 (+b1 folded), resident
            pl.BlockSpec((H1P, H2P), const),            # w2 (+b2 folded), resident
            pl.BlockSpec((H2P, OUTP), const),           # w3 (+b3 folded), resident
        ],
        out_specs=pl.BlockSpec((tb, OUT_FEATURES), lambda i: (i, 0)),  # narrow store
        compiler_params=pltpu.CompilerParams(
            dimension_semantics=("parallel",),          # v7x: shard batch over 2 TCs
            vmem_limit_bytes=32 * 1024 * 1024,
        ),
        cost_estimate=cost,
    )(x_pad, w1p, w2p, w3p)

    return out[:B]


def init_params(key):
    """Deterministic init matching PyTorch Linear shapes (W stored as (in, out))."""
    def linear_init(k, fan_in, fan_out):
        kw, kb = jax.random.split(k)
        bound = 1.0 / jnp.sqrt(jnp.float32(fan_in))
        w = jax.random.uniform(kw, (fan_in, fan_out), jnp.float32, -bound, bound)
        b = jax.random.uniform(kb, (1, fan_out), jnp.float32, -bound, bound)
        return w, b

    k1, k2, k3 = jax.random.split(key, 3)
    w1, b1 = linear_init(k1, IN_FEATURES, LAYER1)
    w2, b2 = linear_init(k2, LAYER1, LAYER2)
    w3, b3 = linear_init(k3, LAYER2, OUT_FEATURES)
    return {"w1": w1, "b1": b1, "w2": w2, "b2": b2, "w3": w3, "b3": b3}


def _reference_forward(x, p, compute_dtype=jnp.bfloat16):
    """Pure-JAX reference with the same bf16 weight/bias/activation casts."""
    f32 = jnp.float32
    cast = lambda a: a.astype(compute_dtype).astype(f32)
    h1 = jnp.maximum(cast(x) @ cast(p["w1"]) + cast(p["b1"]), 0.0)
    h2 = jnp.maximum(cast(h1) @ cast(p["w2"]) + cast(p["b2"]), 0.0)
    return cast(h2) @ cast(p["w3"]) + cast(p["b3"])


if __name__ == "__main__":
    key = jax.random.PRNGKey(0)
    k_param, k_x1, k_x2 = jax.random.split(key, 3)
    params = init_params(k_param)
    padded_params = prepare_params(params)   # padding / bias folding done once

    # Small batch (single grid step).
    batch = 8
    x_small = jax.random.normal(k_x1, (batch, IN_FEATURES), dtype=jnp.float32)
    out_small = jax.block_until_ready(vehicle_nn_forward(x_small, padded_params))
    ref_small = _reference_forward(x_small, params)
    assert out_small.shape == (batch, OUT_FEATURES)
    assert jnp.allclose(out_small, ref_small, atol=2e-3, rtol=2e-3)

    # Larger batch: forces >= 2 balanced blocks (600 -> 2 x 304, 8 pad rows total).
    batch2 = 600
    x_big = jax.random.normal(k_x2, (batch2, IN_FEATURES), dtype=jnp.float32)
    out_big = jax.block_until_ready(vehicle_nn_forward(x_big, padded_params))
    ref_big = _reference_forward(x_big, params)
    assert out_big.shape == (batch2, OUT_FEATURES)
    assert jnp.allclose(out_big, ref_big, atol=2e-3, rtol=2e-3)

    print("KERNEL_OK")
</pallas_src>

<mosaic_0001>
module attributes {stable_mosaic.version = 11 : i64} {
  func.func @_mlp_kernel(%arg0: i32, %arg1: memref<8x8xbf16, #tpu.memory_space<vmem>>, %arg2: memref<8x128xbf16, #tpu.memory_space<vmem>>, %arg3: memref<128x128xbf16, #tpu.memory_space<vmem>>, %arg4: memref<128x128xbf16, #tpu.memory_space<vmem>>, %arg5: memref<8x2xf32, #tpu.memory_space<vmem>>) attributes {dimension_semantics = [#tpu.dimension_semantics<parallel>], iteration_bounds = array<i64: 1>, scalar_prefetch = 0 : i64, scratch_operands = 0 : i64, tpu.core_type = #tpu.core_type<tc>, window_params = [{transform_indices = @transform_0, window_bounds = array<i64: 8, 8>}, {pipeline_mode = #tpu.pipeline_mode<synchronous>, transform_indices = @transform_1, window_bounds = array<i64: 8, 128>}, {pipeline_mode = #tpu.pipeline_mode<synchronous>, transform_indices = @transform_2, window_bounds = array<i64: 128, 128>}, {pipeline_mode = #tpu.pipeline_mode<synchronous>, transform_indices = @transform_3, window_bounds = array<i64: 128, 128>}, {transform_indices = @transform_4, window_bounds = array<i64: 8, 2>}]} {
    %c0 = arith.constant 0 : index
    %c0_0 = arith.constant 0 : index
    %0 = vector.load %arg1[%c0, %c0_0] : memref<8x8xbf16, #tpu.memory_space<vmem>>, vector<8x8xbf16>
    %c0_1 = arith.constant 0 : index
    %c0_2 = arith.constant 0 : index
    %1 = vector.load %arg2[%c0_1, %c0_2] : memref<8x128xbf16, #tpu.memory_space<vmem>>, vector<8x128xbf16>
    %cst = arith.constant dense<0.000000e+00> : vector<8x128xf32>
    %2 = tpu.matmul %0, %1, %cst {dimension_numbers = #tpu.dot_dimension_numbers<[1], [0], [0], [1], [0, 0, 1, 1], [], []>} : vector<8x8xbf16>, vector<8x128xbf16>, vector<8x128xf32> -> vector<8x128xf32>
    %cst_3 = arith.constant 0.000000e+00 : f32
    %3 = vector.broadcast %cst_3 : f32 to vector<8x128xf32>
    %4 = arith.maximumf %2, %3 : vector<8x128xf32>
    %5 = arith.truncf %4 : vector<8x128xf32> to vector<8x128xbf16>
    %c0_4 = arith.constant 0 : index
    %c0_5 = arith.constant 0 : index
    %6 = vector.load %arg3[%c0_4, %c0_5] : memref<128x128xbf16, #tpu.memory_space<vmem>>, vector<128x128xbf16>
    %cst_6 = arith.constant dense<0.000000e+00> : vector<8x128xf32>
    %7 = tpu.matmul %5, %6, %cst_6 {dimension_numbers = #tpu.dot_dimension_numbers<[1], [0], [0], [1], [0, 0, 1, 1], [], []>} : vector<8x128xbf16>, vector<128x128xbf16>, vector<8x128xf32> -> vector<8x128xf32>
    %cst_7 = arith.constant 0.000000e+00 : f32
    %8 = vector.broadcast %cst_7 : f32 to vector<8x128xf32>
    %9 = arith.maximumf %7, %8 : vector<8x128xf32>
    %10 = arith.truncf %9 : vector<8x128xf32> to vector<8x128xbf16>
    %c0_8 = arith.constant 0 : index
    %c0_9 = arith.constant 0 : index
    %11 = vector.load %arg4[%c0_8, %c0_9] : memref<128x128xbf16, #tpu.memory_space<vmem>>, vector<128x128xbf16>
    %cst_10 = arith.constant dense<0.000000e+00> : vector<8x128xf32>
    %12 = tpu.matmul %10, %11, %cst_10 {dimension_numbers = #tpu.dot_dimension_numbers<[1], [0], [0], [1], [0, 0, 1, 1], [], []>} : vector<8x128xbf16>, vector<128x128xbf16>, vector<8x128xf32> -> vector<8x128xf32>
    %13 = vector.extract_strided_slice %12 {offsets = [0, 0], sizes = [8, 2], strides = [1, 1]} : vector<8x128xf32> to vector<8x2xf32>
    %c0_11 = arith.constant 0 : index
    %c0_12 = arith.constant 0 : index
    %14 = vector.load %arg5[%c0_11, %c0_12] : memref<8x2xf32, #tpu.memory_space<vmem>>, vector<8x2xf32>
    tpu.vector_store %arg5[%c0_11, %c0_12], %13 {strides = array<i32>} : memref<8x2xf32, #tpu.memory_space<vmem>>, vector<8x2xf32>,
    return
  }
  func.func @transform_0(%arg0: i32) -> (i32, i32) {
    %c0_i32 = arith.constant 0 : i32
    %c0_i32_0 = arith.constant 0 : i32
    return %arg0, %c0_i32 : i32, i32
  }
  func.func @transform_1(%arg0: i32) -> (i32, i32) {
    %c0_i32 = arith.constant 0 : i32
    %c0_i32_0 = arith.constant 0 : i32
    %c0_i32_1 = arith.constant 0 : i32
    return %c0_i32, %c0_i32_0 : i32, i32
  }
  func.func @transform_2(%arg0: i32) -> (i32, i32) {
    %c0_i32 = arith.constant 0 : i32
    %c0_i32_0 = arith.constant 0 : i32
    %c0_i32_1 = arith.constant 0 : i32
    return %c0_i32, %c0_i32_0 : i32, i32
  }
  func.func @transform_3(%arg0: i32) -> (i32, i32) {
    %c0_i32 = arith.constant 0 : i32
    %c0_i32_0 = arith.constant 0 : i32
    %c0_i32_1 = arith.constant 0 : i32
    return %c0_i32, %c0_i32_0 : i32, i32
  }
  func.func @transform_4(%arg0: i32) -> (i32, i32) {
    %c0_i32 = arith.constant 0 : i32
    %c0_i32_0 = arith.constant 0 : i32
    return %arg0, %c0_i32 : i32, i32
  }
}

</mosaic_0001>

<bundles_post_ra>
// kernel: tpu_custom_call.1
= control target key start
LH: loop header
LB: loop body
LE: loop exit
PB: predicated region body
PF: predicated region fallthrough
CT: control target
= control target key end

     0   :  { %9 = vsyncpa [#allocation3], 0  ;;  %s628_s0 = inlined_call_operand.hbm [shape: bf16[8,8], index: 0, kind: input, shape index: {}]   ;;  %s629_s1 = inlined_call_operand.hbm [shape: bf16[8,128], index: 1, kind: input, shape index: {}]   ;;  %s630_s2 = inlined_call_operand.hbm [shape: bf16[128,128], index: 2, kind: input, shape index: {}]   ;;  %s631_s3 = inlined_call_operand.hbm [shape: bf16[128,128], index: 3, kind: input, shape index: {}]   ;;  %s632_s4 = inlined_call_operand.vmem [shape: f32[8,2], index: 4, kind: output, shape index: {}]  }
   0x1   :  { %10 = vsyncpa [#allocation5], 0 }
   0x2   :  { %11 = vsyncpa [#allocation8], 0  ;;  %s541_s15 = smov [#allocation4]   ;;  %s542_s17 = smov [#allocation2]  }
   0x3   :  { %s28_s16 = sshll.u32 %s541_s15, 4  ;;  %s18_s18 = sshll.u32 %s542_s17, 4  ;;  %s29_s16 = int_to_ptr.vmem [resolvable:$true] %s28_s16  ;;  %s19_s18 = int_to_ptr.vmem [resolvable:$true] %s18_s18 }
   0x4   :  { %s447_s21 = scalar_lea.hbm %s629_s1, 64 }
   0x5   :  { %p448_p0 = scmp.ne.s32.totalorder %s629_s1, %s447_s21  ;;  %p451_p1 = scmp.lt.u32.totalorder %s447_s21, %s629_s1 }
   0x7   :  { %p453_p2 = pnand %p451_p1, %p448_p0 }
   0x9   :  { %456 = shalt.err (!%p453_p2)
}
   0xa   :  { %s457_s26 = scalar_lea.vmem %s29_s16, 64  ;;  %p462_p4 = scmp.lt.s32.totalorder %s29_s16, %s29_s16 }
   0xb   :  { %p458_p3 = scmp.ne.s32.totalorder %s29_s16, %s457_s26  ;;  %p463_p5 = scmp.lt.s32.totalorder %s457_s26, %s457_s26 }
   0xd   :  { %p464_p6 = por %p463_p5, %p462_p4 }
   0xf   :  { %p465_p7 = pnand %p464_p6, %p458_p3 }
  0x11   :  { %468 = shalt.err (!%p465_p7)
}
  0x12   :  { %31 = dma.hbm_to_vmem [thread:$0]  %s629_s1, 64, %s29_s16, [#allocation5]  }
  0x13   :  { %s469_s5 = scalar_lea.hbm %s628_s0, 64 }
  0x14   :  { %p470_p8 = scmp.ne.s32.totalorder %s628_s0, %s469_s5  ;;  %p473_p9 = scmp.lt.u32.totalorder %s469_s5, %s628_s0 }
  0x16   :  { %p475_p10 = pnand %p473_p9, %p470_p8 }
  0x18   :  { %478 = shalt.err (!%p475_p10)
}
  0x19   :  { %s479_s10 = scalar_lea.vmem %s19_s18, 64  ;;  %p484_p12 = scmp.lt.s32.totalorder %s19_s18, %s19_s18 }
  0x1a   :  { %p480_p11 = scmp.ne.s32.totalorder %s19_s18, %s479_s10  ;;  %p485_p13 = scmp.lt.s32.totalorder %s479_s10, %s479_s10 }
  0x1c   :  { %p486_p0 = por %p485_p13, %p484_p12 }
  0x1e   :  { %p487_p1 = pnand %p486_p0, %p480_p11 }
  0x20   :  { %490 = shalt.err (!%p487_p1)
}
  0x21   :  { %21 = dma.hbm_to_vmem [thread:$0]  %s628_s0, 64, %s19_s18, [#allocation3]  }
  0x22   :  { %s543_s12 = smov [#allocation6]   ;;  %s491_s16 = scalar_lea.hbm %s630_s2, 1024 }
  0x23   :  { %s37_s13 = sshll.u32 %s543_s12, 4  ;;  %p492_p2 = scmp.ne.s32.totalorder %s630_s2, %s491_s16  ;;  %s38_s13 = int_to_ptr.vmem [resolvable:$true] %s37_s13 }
  0x24   :  { %p495_p3 = scmp.lt.u32.totalorder %s491_s16, %s630_s2 }
  0x26   :  { %p497_p4 = pnand %p495_p3, %p492_p2 }
  0x28   :  { %500 = shalt.err (!%p497_p4)
}
  0x29   :  { %s501_s22 = scalar_lea.vmem %s38_s13, 1024  ;;  %p506_p6 = scmp.lt.s32.totalorder %s38_s13, %s38_s13 }
  0x2a   :  { %p502_p5 = scmp.ne.s32.totalorder %s38_s13, %s501_s22  ;;  %p507_p7 = scmp.lt.s32.totalorder %s501_s22, %s501_s22 }
  0x2c   :  { %p508_p8 = por %p507_p7, %p506_p6 }
  0x2e   :  { %p509_p9 = pnand %p508_p8, %p502_p5 }
  0x30   :  { %512 = shalt.err (!%p509_p9)
}
  0x31   :  { %s544_s0 = smov 64   ;;  %s545_s18 = smov 4  }
  0x32   :  { %43 = dma.hbm_to_vmem [thread:$0]  %s630_s2, 1024, %s38_s13, [#allocation5], %s544_s0, %s544_s0, %s545_s18  }
  0x33   :  { %s546_s25 = smov [#allocation7]   ;;  %s513_s29 = scalar_lea.hbm %s631_s3, 1024 }
  0x34   :  { %s49_s26 = sshll.u32 %s546_s25, 4  ;;  %p514_p10 = scmp.ne.s32.totalorder %s631_s3, %s513_s29  ;;  %s50_s26 = int_to_ptr.vmem [resolvable:$true] %s49_s26 }
  0x35   :  { %p517_p11 = scmp.lt.u32.totalorder %s513_s29, %s631_s3 }
  0x37   :  { %p519_p12 = pnand %p517_p11, %p514_p10 }
  0x39   :  { %522 = shalt.err (!%p519_p12)
}
  0x3a   :  { %s523_s8 = scalar_lea.vmem %s50_s26, 1024  ;;  %p528_p0 = scmp.lt.s32.totalorder %s50_s26, %s50_s26 }
  0x3b   :  { %p524_p13 = scmp.ne.s32.totalorder %s50_s26, %s523_s8  ;;  %p529_p1 = scmp.lt.s32.totalorder %s523_s8, %s523_s8 }
  0x3d   :  { %p530_p2 = por %p529_p1, %p528_p0 }
  0x3f   :  { %p531_p3 = pnand %p530_p2, %p524_p13 }
  0x41   :  { %534 = shalt.err (!%p531_p3)
}
  0x42   :  { %55 = dma.hbm_to_vmem [thread:$0]  %s631_s3, 1024, %s50_s26, [#allocation8], %s544_s0, %s544_s0, %s545_s18  }
  0x43   :  { %535 = dma.done.wait [#allocation3], 64  }
  0x44   :  { %536 = vsyncadd [#allocation3], 4294967232 }
  0x45   :  { %537 = dma.done.wait [#allocation5], 1088  }
  0x46   :  { %538 = vsyncadd [#allocation5], 4294966208 }
  0x47   :  { %539 = dma.done.wait [#allocation8], 1024  }
  0x48   :  { %540 = vsyncadd [#allocation8], 4294966272  ;;  %v547_v0 = vmov 0.0   ;;  %vm548_vm0 = vmmov 0   ;;  %vm75_vm1 = vcmask 1043456   ;;  %vm71_vm2 = vcmask 64512  }
  0x49   :  { %377 = vmatprep.subr.bf16.mxu0 %v547_v0  ;;  %379 = vmatprep.mubr.msk.bf16.mxu0 %vm548_vm0, %v547_v0  ;;  %v70_v1 = vld [vmem:[#allocation4] sm:$0xf]  ;;  %v431_v3 = vld [vmem:[#allocation6] sm:$0xff]   ;;  %v69_v4 = vld [vmem:[#allocation2] sm:$0xf]  ;;  %vm331_vm3 = vcmask 15360  }
  0x4a   :  { %383 = vmatprep.subr.bf16.mxu1 %v547_v0  ;;  %399 = vmatprep.mubr.msk.bf16.mxu1 %vm548_vm0, %v547_v0  ;;  %v77_v2 = vsel %vm75_vm1, %v70_v1, 0  ;;  %v432_v5 = vld [vmem:[#allocation6 + $0x8] sm:$0xff]   ;;  %v433_v6 = vld [vmem:[#allocation6 + $0x10] sm:$0xff]   ;;  %v434_v7 = vld [vmem:[#allocation6 + $0x18] sm:$0xff]  }
  0x4b   :  { %378 = vmatpush3.bf16.msra.mxu0 %v77_v2  ;;  %384 = vmatpush3.bf16.msra.mxu1 %v431_v3  ;;  %v435_v8 = vld [vmem:[#allocation6 + $0x20] sm:$0xff]   ;;  %v436_v9 = vld [vmem:[#allocation6 + $0x28] sm:$0xff]   ;;  %v437_v10 = vld [vmem:[#allocation6 + $0x30] sm:$0xff]  }
  0x4c   :  { %403 = vmatprep.subr.bf16.mxu0 %v547_v0  ;;  %385 = vmatprep.subr.bf16.mxu1 %v547_v0  ;;  %v438_v11 = vld [vmem:[#allocation6 + $0x38] sm:$0xff]   ;;  %v439_v12 = vld [vmem:[#allocation7] sm:$0xff]   ;;  %v440_v13 = vld [vmem:[#allocation7 + $0x8] sm:$0xff]  }
  0x4d   :  { %v441_v14 = vld [vmem:[#allocation7 + $0x10] sm:$0xff]   ;;  %v442_v15 = vld [vmem:[#allocation7 + $0x18] sm:$0xff]   ;;  %v443_v16 = vld [vmem:[#allocation7 + $0x20] sm:$0xff]  }
  0x4e   :  { %380 = vmatmul.mubr.msk.bf16.vlgmr.msra.gmra.mrb[0].mxu0 %vm71_vm2, %v69_v4  ;;  %v444_v17 = vld [vmem:[#allocation7 + $0x28] sm:$0xff]   ;;  %v445_v18 = vld [vmem:[#allocation7 + $0x30] sm:$0xff]   ;;  %v446_v25 = vld [vmem:[#allocation7 + $0x38] sm:$0xff]  }
  0x4f   :  { %419 = vmatprep.mubr.msk.bf16.mxu0 %vm548_vm0, %v547_v0  ;;  %386 = vmatpush3.bf16.msra.mxu1 %v432_v5 }
  0x50   :  { %387 = vmatprep.subr.bf16.mxu1 %v547_v0  ;;  %404 = vmatpush3.bf16.msra.mxu0 %v439_v12 }
  0x51   :  { %405 = vmatprep.subr.bf16.mxu0 %v547_v0 }
  0x53   :  { %388 = vmatpush3.bf16.msra.mxu1 %v433_v6 }
  0x54   :  { %389 = vmatprep.subr.bf16.mxu1 %v547_v0  ;;  %406 = vmatpush3.bf16.msra.mxu0 %v440_v13 }
  0x55   :  { %407 = vmatprep.subr.bf16.mxu0 %v547_v0 }
  0x57   :  { %390 = vmatpush3.bf16.msra.mxu1 %v434_v7 }
  0x58   :  { %391 = vmatprep.subr.bf16.mxu1 %v547_v0  ;;  %408 = vmatpush3.bf16.msra.mxu0 %v441_v14 }
  0x59   :  { %409 = vmatprep.subr.bf16.mxu0 %v547_v0 }
  0x5b   :  { %392 = vmatpush3.bf16.msra.mxu1 %v435_v8 }
  0x5c   :  { %393 = vmatprep.subr.bf16.mxu1 %v547_v0  ;;  %410 = vmatpush3.bf16.msra.mxu0 %v442_v15 }
  0x5d   :  { %411 = vmatprep.subr.bf16.mxu0 %v547_v0 }
  0x5f   :  { %394 = vmatpush3.bf16.msra.mxu1 %v436_v9 }
  0x60   :  { %395 = vmatprep.subr.bf16.mxu1 %v547_v0  ;;  %412 = vmatpush3.bf16.msra.mxu0 %v443_v16 }
  0x61   :  { %413 = vmatprep.subr.bf16.mxu0 %v547_v0 }
  0x63   :  { %396 = vmatpush3.bf16.msra.mxu1 %v437_v10 }
  0x64   :  { %397 = vmatprep.subr.bf16.mxu1 %v547_v0  ;;  %414 = vmatpush3.bf16.msra.mxu0 %v444_v17 }
  0x65   :  { %415 = vmatprep.subr.bf16.mxu0 %v547_v0 }
  0x67   :  { %398 = vmatpush3.bf16.msra.mxu1 %v438_v11 }
  0x68   :  { %416 = vmatpush3.bf16.msra.mxu0 %v445_v18 }
  0x69   :  { %417 = vmatprep.subr.bf16.mxu0 %v547_v0 }
  0x6c   :  { %418 = vmatpush3.bf16.msra.mxu0 %v446_v25 }
 0x121   :  { %v113_v19 = vpop.f32.mrb[0].mxu0 }
 0x122   :  { %v119_v20 = vmax.f32 %v113_v19, 0.0  ;;  %v381_v21 = vpop.f32.mrb[1].mxu0 }
 0x123   :  { %v116_v22 = vpop.f32.mrb[2].mxu0 }
 0x124   :  { %v120_v23 = vpack.c.bf16 %v119_v20, %v119_v20  ;;  %v382_v24 = vpop.f32.mrb[3].mxu0 }
 0x126   :  { %400 = vmatmul.mubr.bf16.vlgmr.msra.gmra.mrb[0].mxu1 %v120_v23 }
 0x1f9   :  { %v219_v26 = vpop.f32.mrb[0].mxu1 }
 0x1fa   :  { %v225_v27 = vmax.f32 %v219_v26, 0.0  ;;  %v401_v28 = vpop.f32.mrb[1].mxu1 }
 0x1fb   :  { %v222_v29 = vpop.f32.mrb[2].mxu1 }
 0x1fc   :  { %v226_v30 = vpack.c.bf16 %v225_v27, %v225_v27  ;;  %v402_v31 = vpop.f32.mrb[3].mxu1 }
 0x1fe   :  { %420 = vmatmul.mubr.bf16.vlgmr.msra.gmra.mrb[4].mxu0 %v226_v30 }
 0x2d1   :  { %v325_v32 = vpop.f32.mrb[4].mxu0 }
 0x2d2   :  { %332 = vst.msk [vmem:[%s632_s4] sm:$0xff] %vm331_vm3, %v325_v32  ;;  %v421_v33 = vpop.f32.mrb[5].mxu0 }
 0x2d3   :  { %v328_v34 = vpop.f32.mrb[6].mxu0 }
 0x2d4   :  { %v422_v35 = vpop.f32.mrb[7].mxu0 }
 0x2d5   :  { %337 = vsyncpa [#allocation3], 1 }
 0x2d6   :  { %338 = vsyncpa [#allocation5], 1 }
 0x2d7   :  { %339 = vsyncpa [#allocation8], 1 }

</bundles_post_ra>
